<compile_context>
chip_gen: v6e
topology: v6e:2x2x1
jax: 0.10.0
libtpu: 0.0.40
codegen_flags: <defaults>
</compile_context>

<pallas_src>
import functools

import jax
import jax.numpy as jnp
from jax.experimental import pallas as pl
from jax.experimental.pallas import tpu as pltpu


def _round_up(x, m):
    return ((x + m - 1) // m) * m


def mlp_kernel(x_ref, w1_ref, b1_ref, w2_ref, b2_ref, w3_ref, b3_ref, o_ref):
    """relu(fc1) -> relu(fc2) -> fc3 on one (TM, input_dims) batch tile.

    Weights arrive pre-transposed to (in, out) and pre-cast to bf16; biases are
    f32 (1, out).  Matmuls run on the MXU with bf16 operands / f32 accumulation;
    bias-add + ReLU stay in f32 (v5e VPU has no bf16).  The only bf16 cast of
    the result is the final store (lane-dense padded slab).
    """
    x = x_ref[...].astype(jnp.bfloat16)
    h1 = jnp.dot(x, w1_ref[...], preferred_element_type=jnp.float32)
    h1 = jnp.maximum(h1 + b1_ref[...], 0.0)
    h2 = jnp.dot(h1.astype(jnp.bfloat16), w2_ref[...],
                 preferred_element_type=jnp.float32)
    h2 = jnp.maximum(h2 + b2_ref[...], 0.0)
    out = jnp.dot(h2.astype(jnp.bfloat16), w3_ref[...],
                  preferred_element_type=jnp.float32)
    o_ref[...] = (out + b3_ref[...]).astype(o_ref.dtype)   # bf16 cast is last op


@functools.partial(jax.jit, static_argnames=("n_actions", "tm_cap"))
def generic_network_forward(x, prepared, n_actions, *, tm_cap=1024):
    """x: (batch, input_dims) f32.  prepared: output of prepare_params()."""
    w1, b1 = prepared["w1"], prepared["b1"]
    w2, b2 = prepared["w2"], prepared["b2"]
    w3, b3 = prepared["w3"], prepared["b3"]      # already bf16 / lane-padded

    batch, input_dims = x.shape
    fc1_dims = w1.shape[1]
    fc2_dims = w2.shape[1]
    n_pad = w3.shape[1]                          # multiple of 128

    # --- batch tiling: pad only to a multiple of 8, derive TM from batch_p ---
    batch_p8 = _round_up(batch, 8)
    if batch_p8 < 256:
        n_tiles = 1                              # too small to split usefully
    else:
        n_tiles = max(2, pl.cdiv(batch_p8, tm_cap))   # >=2 tiles -> both v7x TCs
    tm = _round_up(pl.cdiv(batch_p8, n_tiles), 8)     # always a multiple of 8
    batch_p = n_tiles * tm                            # waste <= (n_tiles-1)*8 + 7 rows
    if batch_p != batch:
        x = jnp.pad(x, ((0, batch_p - batch), (0, 0)))
    grid = (n_tiles,)

    # Advisory cost: real (unpadded) flops, actual bytes moved.
    flops = 2 * batch * (input_dims * fc1_dims + fc1_dims * fc2_dims
                         + fc2_dims * n_actions)
    bytes_accessed = (
        batch_p * input_dims * 4                        # x in (f32)
        + (w1.size + w2.size + w3.size) * 2             # bf16 weights
        + (b1.size + b2.size + b3.size) * 4             # f32 biases
        + batch_p * n_pad * 2                           # bf16 output slab
    )

    out = pl.pallas_call(
        mlp_kernel,
        out_shape=jax.ShapeDtypeStruct((batch_p, n_pad), jnp.bfloat16),
        grid=grid,
        in_specs=[
            pl.BlockSpec((tm, input_dims), lambda i: (i, 0)),   # x tile
            pl.BlockSpec(w1.shape, lambda i: (0, 0)),           # VMEM-resident weights
            pl.BlockSpec(b1.shape, lambda i: (0, 0)),
            pl.BlockSpec(w2.shape, lambda i: (0, 0)),
            pl.BlockSpec(b2.shape, lambda i: (0, 0)),
            pl.BlockSpec(w3.shape, lambda i: (0, 0)),
            pl.BlockSpec(b3.shape, lambda i: (0, 0)),
        ],
        out_specs=pl.BlockSpec((tm, n_pad), lambda i: (i, 0)),  # lane-dense slab
        compiler_params=pltpu.CompilerParams(
            dimension_semantics=("parallel",),    # shards batch across v7x's 2 TCs
            vmem_limit_bytes=32 * 1024 * 1024,    # safe on v5e/v6e/v7x
        ),
        cost_estimate=pl.CostEstimate(
            flops=flops, transcendentals=0, bytes_accessed=bytes_accessed),
    )(x, w1, b1, w2, b2, w3, b3)

    return out[:batch, :n_actions].astype(jnp.float32)


def init_linear(key, fan_in, fan_out):
    """Mimics PyTorch's default nn.Linear init (uniform +/- 1/sqrt(fan_in)); stored transposed."""
    kw, kb = jax.random.split(key)
    bound = 1.0 / jnp.sqrt(jnp.float32(fan_in))
    w = jax.random.uniform(kw, (fan_in, fan_out), jnp.float32, -bound, bound)
    b = jax.random.uniform(kb, (1, fan_out), jnp.float32, -bound, bound)
    return w, b


def make_params(key, input_dims, fc1_dims, fc2_dims, n_actions):
    k1, k2, k3 = jax.random.split(key, 3)
    w1, b1 = init_linear(k1, input_dims, fc1_dims)
    w2, b2 = init_linear(k2, fc1_dims, fc2_dims)
    w3, b3 = init_linear(k3, fc2_dims, n_actions)
    return {"w1": w1, "b1": b1, "w2": w2, "b2": b2, "w3": w3, "b3": b3}


def prepare_params(params, lane=128):
    """One-time (per optimizer step) weight prep: bf16 cast + lane-pad the head.

    Keeps all per-call forward passes free of weight casts/pads.
    """
    n_actions = params["w3"].shape[1]
    n_pad = _round_up(n_actions, lane)
    w3, b3 = params["w3"], params["b3"]
    if n_pad != n_actions:
        w3 = jnp.pad(w3, ((0, 0), (0, n_pad - n_actions)))
        b3 = jnp.pad(b3, ((0, 0), (0, n_pad - n_actions)))
    return {
        "w1": params["w1"].astype(jnp.bfloat16),
        "b1": params["b1"].astype(jnp.float32),
        "w2": params["w2"].astype(jnp.bfloat16),
        "b2": params["b2"].astype(jnp.float32),
        "w3": w3.astype(jnp.bfloat16),
        "b3": b3.astype(jnp.float32),
    }


def reference_forward(x, params):
    """Plain-JAX reference with the same bf16-matmul / f32-accumulate / bf16-store math."""
    bf = lambda a: a.astype(jnp.bfloat16)
    h1 = jnp.maximum(
        jnp.dot(bf(x), bf(params["w1"]), preferred_element_type=jnp.float32)
        + params["b1"], 0.0)
    h2 = jnp.maximum(
        jnp.dot(bf(h1), bf(params["w2"]), preferred_element_type=jnp.float32)
        + params["b2"], 0.0)
    out = (jnp.dot(bf(h2), bf(params["w3"]), preferred_element_type=jnp.float32)
           + params["b3"])
    return out.astype(jnp.bfloat16).astype(jnp.float32)


if __name__ == "__main__":
    # Small shapes consistent with GenericNetwork(alpha, input_dims, fc1_dims, fc2_dims, n_actions)
    batch, input_dims, fc1_dims, fc2_dims, n_actions = 8, 16, 64, 64, 4

    key = jax.random.PRNGKey(0)
    k_x, k_p = jax.random.split(key)
    x = jax.random.normal(k_x, (batch, input_dims), jnp.float32)
    params = make_params(k_p, input_dims, fc1_dims, fc2_dims, n_actions)
    prepared = prepare_params(params)

    out = generic_network_forward(x, prepared, n_actions)
    jax.block_until_ready(out)
    assert out.shape == (batch, n_actions)

    ref = reference_forward(x, params)
    assert jnp.allclose(out, ref, atol=1e-2, rtol=1e-2), (
        f"max abs err {jnp.max(jnp.abs(out - ref))}")

    # Larger, non-dividing batch: exercises 8-row padding + the 2-tile grid path.
    xb = jax.random.normal(k_x, (300, input_dims), jnp.float32)
    outb = generic_network_forward(xb, prepared, n_actions)
    jax.block_until_ready(outb)
    refb = reference_forward(xb, params)
    assert outb.shape == (300, n_actions)
    assert jnp.allclose(outb, refb, atol=1e-2, rtol=1e-2), (
        f"max abs err {jnp.max(jnp.abs(outb - refb))}")

    print("KERNEL_OK")
</pallas_src>

<mosaic_0001>
module attributes {stable_mosaic.version = 11 : i64} {
  func.func @mlp_kernel(%arg0: i32, %arg1: memref<8x16xf32, #tpu.memory_space<vmem>>, %arg2: memref<16x64xbf16, #tpu.memory_space<vmem>>, %arg3: memref<1x64xf32, #tpu.memory_space<vmem>>, %arg4: memref<64x64xbf16, #tpu.memory_space<vmem>>, %arg5: memref<1x64xf32, #tpu.memory_space<vmem>>, %arg6: memref<64x128xbf16, #tpu.memory_space<vmem>>, %arg7: memref<1x128xf32, #tpu.memory_space<vmem>>, %arg8: memref<8x128xbf16, #tpu.memory_space<vmem>>) attributes {dimension_semantics = [#tpu.dimension_semantics<parallel>], iteration_bounds = array<i64: 1>, scalar_prefetch = 0 : i64, scratch_operands = 0 : i64, tpu.core_type = #tpu.core_type<tc>, window_params = [{transform_indices = @transform_0, window_bounds = array<i64: 8, 16>}, {pipeline_mode = #tpu.pipeline_mode<synchronous>, transform_indices = @transform_1, window_bounds = array<i64: 16, 64>}, {pipeline_mode = #tpu.pipeline_mode<synchronous>, transform_indices = @transform_2, window_bounds = array<i64: 1, 64>}, {pipeline_mode = #tpu.pipeline_mode<synchronous>, transform_indices = @transform_3, window_bounds = array<i64: 64, 64>}, {pipeline_mode = #tpu.pipeline_mode<synchronous>, transform_indices = @transform_4, window_bounds = array<i64: 1, 64>}, {pipeline_mode = #tpu.pipeline_mode<synchronous>, transform_indices = @transform_5, window_bounds = array<i64: 64, 128>}, {pipeline_mode = #tpu.pipeline_mode<synchronous>, transform_indices = @transform_6, window_bounds = array<i64: 1, 128>}, {transform_indices = @transform_7, window_bounds = array<i64: 8, 128>}]} {
    %c0 = arith.constant 0 : index
    %c0_0 = arith.constant 0 : index
    %0 = vector.load %arg1[%c0, %c0_0] : memref<8x16xf32, #tpu.memory_space<vmem>>, vector<8x16xf32>
    %1 = arith.truncf %0 : vector<8x16xf32> to vector<8x16xbf16>
    %c0_1 = arith.constant 0 : index
    %c0_2 = arith.constant 0 : index
    %2 = vector.load %arg2[%c0_1, %c0_2] : memref<16x64xbf16, #tpu.memory_space<vmem>>, vector<16x64xbf16>
    %cst = arith.constant dense<0.000000e+00> : vector<8x64xf32>
    %3 = tpu.matmul %1, %2, %cst {dimension_numbers = #tpu.dot_dimension_numbers<[1], [0], [0], [1], [0, 0, 1, 1], [], []>} : vector<8x16xbf16>, vector<16x64xbf16>, vector<8x64xf32> -> vector<8x64xf32>
    %c0_3 = arith.constant 0 : index
    %c0_4 = arith.constant 0 : index
    %4 = vector.load %arg3[%c0_3, %c0_4] : memref<1x64xf32, #tpu.memory_space<vmem>>, vector<1x64xf32>
    %5 = vector.broadcast %4 : vector<1x64xf32> to vector<8x64xf32>
    %6 = arith.addf %3, %5 : vector<8x64xf32>
    %cst_5 = arith.constant 0.000000e+00 : f32
    %7 = vector.broadcast %cst_5 : f32 to vector<8x64xf32>
    %8 = arith.maximumf %6, %7 : vector<8x64xf32>
    %9 = arith.truncf %8 : vector<8x64xf32> to vector<8x64xbf16>
    %c0_6 = arith.constant 0 : index
    %c0_7 = arith.constant 0 : index
    %10 = vector.load %arg4[%c0_6, %c0_7] : memref<64x64xbf16, #tpu.memory_space<vmem>>, vector<64x64xbf16>
    %cst_8 = arith.constant dense<0.000000e+00> : vector<8x64xf32>
    %11 = tpu.matmul %9, %10, %cst_8 {dimension_numbers = #tpu.dot_dimension_numbers<[1], [0], [0], [1], [0, 0, 1, 1], [], []>} : vector<8x64xbf16>, vector<64x64xbf16>, vector<8x64xf32> -> vector<8x64xf32>
    %c0_9 = arith.constant 0 : index
    %c0_10 = arith.constant 0 : index
    %12 = vector.load %arg5[%c0_9, %c0_10] : memref<1x64xf32, #tpu.memory_space<vmem>>, vector<1x64xf32>
    %13 = vector.broadcast %12 : vector<1x64xf32> to vector<8x64xf32>
    %14 = arith.addf %11, %13 : vector<8x64xf32>
    %cst_11 = arith.constant 0.000000e+00 : f32
    %15 = vector.broadcast %cst_11 : f32 to vector<8x64xf32>
    %16 = arith.maximumf %14, %15 : vector<8x64xf32>
    %17 = arith.truncf %16 : vector<8x64xf32> to vector<8x64xbf16>
    %c0_12 = arith.constant 0 : index
    %c0_13 = arith.constant 0 : index
    %18 = vector.load %arg6[%c0_12, %c0_13] : memref<64x128xbf16, #tpu.memory_space<vmem>>, vector<64x128xbf16>
    %cst_14 = arith.constant dense<0.000000e+00> : vector<8x128xf32>
    %19 = tpu.matmul %17, %18, %cst_14 {dimension_numbers = #tpu.dot_dimension_numbers<[1], [0], [0], [1], [0, 0, 1, 1], [], []>} : vector<8x64xbf16>, vector<64x128xbf16>, vector<8x128xf32> -> vector<8x128xf32>
    %c0_15 = arith.constant 0 : index
    %c0_16 = arith.constant 0 : index
    %20 = vector.load %arg7[%c0_15, %c0_16] : memref<1x128xf32, #tpu.memory_space<vmem>>, vector<1x128xf32>
    %21 = vector.broadcast %20 : vector<1x128xf32> to vector<8x128xf32>
    %22 = arith.addf %19, %21 : vector<8x128xf32>
    %23 = arith.truncf %22 : vector<8x128xf32> to vector<8x128xbf16>
    %c0_17 = arith.constant 0 : index
    %c0_18 = arith.constant 0 : index
    %24 = vector.load %arg8[%c0_17, %c0_18] : memref<8x128xbf16, #tpu.memory_space<vmem>>, vector<8x128xbf16>
    tpu.vector_store %arg8[%c0_17, %c0_18], %23 {strides = array<i32>} : memref<8x128xbf16, #tpu.memory_space<vmem>>, vector<8x128xbf16>,
    return
  }
  func.func @transform_0(%arg0: i32) -> (i32, i32) {
    %c0_i32 = arith.constant 0 : i32
    %c0_i32_0 = arith.constant 0 : i32
    return %arg0, %c0_i32 : i32, i32
  }
  func.func @transform_1(%arg0: i32) -> (i32, i32) {
    %c0_i32 = arith.constant 0 : i32
    %c0_i32_0 = arith.constant 0 : i32
    %c0_i32_1 = arith.constant 0 : i32
    return %c0_i32, %c0_i32_0 : i32, i32
  }
  func.func @transform_2(%arg0: i32) -> (i32, i32) {
    %c0_i32 = arith.constant 0 : i32
    %c0_i32_0 = arith.constant 0 : i32
    %c0_i32_1 = arith.constant 0 : i32
    return %c0_i32, %c0_i32_0 : i32, i32
  }
  func.func @transform_3(%arg0: i32) -> (i32, i32) {
    %c0_i32 = arith.constant 0 : i32
    %c0_i32_0 = arith.constant 0 : i32
    %c0_i32_1 = arith.constant 0 : i32
    return %c0_i32, %c0_i32_0 : i32, i32
  }
  func.func @transform_4(%arg0: i32) -> (i32, i32) {
    %c0_i32 = arith.constant 0 : i32
    %c0_i32_0 = arith.constant 0 : i32
    %c0_i32_1 = arith.constant 0 : i32
    return %c0_i32, %c0_i32_0 : i32, i32
  }
  func.func @transform_5(%arg0: i32) -> (i32, i32) {
    %c0_i32 = arith.constant 0 : i32
    %c0_i32_0 = arith.constant 0 : i32
    %c0_i32_1 = arith.constant 0 : i32
    return %c0_i32, %c0_i32_0 : i32, i32
  }
  func.func @transform_6(%arg0: i32) -> (i32, i32) {
    %c0_i32 = arith.constant 0 : i32
    %c0_i32_0 = arith.constant 0 : i32
    %c0_i32_1 = arith.constant 0 : i32
    return %c0_i32, %c0_i32_0 : i32, i32
  }
  func.func @transform_7(%arg0: i32) -> (i32, i32) {
    %c0_i32 = arith.constant 0 : i32
    %c0_i32_0 = arith.constant 0 : i32
    return %arg0, %c0_i32 : i32, i32
  }
}

</mosaic_0001>

<bundles_post_ra>
// kernel: generic_network_forward.1
= control target key start
LH: loop header
LB: loop body
LE: loop exit
PB: predicated region body
PF: predicated region fallthrough
CT: control target
= control target key end

     0   :  { %12 = vsyncpa [#allocation3], 0  ;;  %s562_s0 = inlined_call_operand.hbm [shape: f32[8,16], index: 0, kind: input, shape index: {}]   ;;  %s563_s1 = inlined_call_operand.hbm [shape: bf16[16,64], index: 1, kind: input, shape index: {}]   ;;  %s564_s2 = inlined_call_operand.vmem [shape: f32[1,64], index: 2, kind: input, shape index: {}]   ;;  %s565_s3 = inlined_call_operand.hbm [shape: bf16[64,64], index: 3, kind: input, shape index: {}]   ;;  %s566_s4 = inlined_call_operand.vmem [shape: f32[1,64], index: 4, kind: input, shape index: {}]   ;;  %s567_s5 = inlined_call_operand.hbm [shape: bf16[64,128], index: 5, kind: input, shape index: {}]   ;;  %s568_s6 = inlined_call_operand.vmem [shape: f32[1,128], index: 6, kind: input, shape index: {}]   ;;  %s569_s7 = inlined_call_operand.vmem [shape: bf16[8,128], index: 7, kind: output, shape index: {}]  }
   0x1   :  { %13 = vsyncpa [#allocation5], 0 }
   0x2   :  { %14 = vsyncpa [#allocation8], 0  ;;  %s479_s24 = smov [#allocation4]  }
   0x3   :  { %s30_s25 = sshll.u32 %s479_s24, 4  ;;  %s31_s25 = int_to_ptr.vmem [resolvable:$true] %s30_s25 }
   0x4   :  { %s401_s26 = scalar_lea.vmem %s31_s25, 128  ;;  %p406_p1 = scmp.lt.s32.totalorder %s31_s25, %s31_s25 }
   0x5   :  { %p402_p0 = scmp.ne.s32.totalorder %s31_s25, %s401_s26  ;;  %p407_p2 = scmp.lt.s32.totalorder %s401_s26, %s401_s26 }
   0x7   :  { %p408_p3 = por %p407_p2, %p406_p1 }
   0x9   :  { %p409_p4 = pnand %p408_p3, %p402_p0 }
   0xb   :  { %412 = shalt.err (!%p409_p4)
}
   0xc   :  { %s480_s27 = smov 64   ;;  %s481_s28 = smov 4  }
   0xd   :  { %36 = dma.hbm_to_vmem [thread:$0]  %s563_s1, 128, %s31_s25, [#allocation5], %s480_s27, %s480_s27, %s481_s28  }
   0xe   :  { %s482_s8 = smov [#allocation2]   ;;  %s483_s10 = smov [#allocation6]  }
   0xf   :  { %s21_s9 = sshll.u32 %s482_s8, 4  ;;  %s44_s11 = sshll.u32 %s483_s10, 4  ;;  %s22_s9 = int_to_ptr.vmem [resolvable:$true] %s21_s9  ;;  %s45_s11 = int_to_ptr.vmem [resolvable:$true] %s44_s11 }
  0x10   :  { %s421_s12 = scalar_lea.vmem %s22_s9, 128  ;;  %p426_p6 = scmp.lt.s32.totalorder %s22_s9, %s22_s9 }
  0x11   :  { %p422_p5 = scmp.ne.s32.totalorder %s22_s9, %s421_s12  ;;  %p427_p7 = scmp.lt.s32.totalorder %s421_s12, %s421_s12 }
  0x13   :  { %p428_p8 = por %p427_p7, %p426_p6 }
  0x15   :  { %p429_p9 = pnand %p428_p8, %p422_p5 }
  0x17   :  { %432 = shalt.err (!%p429_p9)
}
  0x18   :  { %24 = dma.hbm_to_vmem [thread:$0]  %s562_s0, 128, %s22_s9, [#allocation3]  }
  0x19   :  { %s441_s15 = scalar_lea.vmem %s45_s11, 512  ;;  %p446_p11 = scmp.lt.s32.totalorder %s45_s11, %s45_s11 }
  0x1a   :  { %p442_p10 = scmp.ne.s32.totalorder %s45_s11, %s441_s15  ;;  %p447_p12 = scmp.lt.s32.totalorder %s441_s15, %s441_s15 }
  0x1c   :  { %p448_p13 = por %p447_p12, %p446_p11 }
  0x1e   :  { %p449_p0 = pnand %p448_p13, %p442_p10 }
  0x20   :  { %452 = shalt.err (!%p449_p0)
}
  0x21   :  { %50 = dma.hbm_to_vmem [thread:$0]  %s565_s3, 512, %s45_s11, [#allocation5], %s480_s27, %s480_s27, %s481_s28  }
  0x22   :  { %s484_s17 = smov [#allocation7]  }
  0x23   :  { %s58_s18 = sshll.u32 %s484_s17, 4  ;;  %s59_s18 = int_to_ptr.vmem [resolvable:$true] %s58_s18 }
  0x24   :  { %s461_s19 = scalar_lea.vmem %s59_s18, 512  ;;  %p466_p2 = scmp.lt.s32.totalorder %s59_s18, %s59_s18 }
  0x25   :  { %p462_p1 = scmp.ne.s32.totalorder %s59_s18, %s461_s19  ;;  %p467_p3 = scmp.lt.s32.totalorder %s461_s19, %s461_s19 }
  0x27   :  { %p468_p4 = por %p467_p3, %p466_p2 }
  0x29   :  { %p469_p5 = pnand %p468_p4, %p462_p1 }
  0x2b   :  { %472 = shalt.err (!%p469_p5)
}
  0x2c   :  { %64 = dma.hbm_to_vmem [thread:$0]  %s567_s5, 512, %s59_s18, [#allocation8], %s480_s27, %s480_s27, %s481_s28  }
  0x2d   :  { %473 = dma.done.wait [#allocation3], 128  }
  0x2e   :  { %474 = vsyncadd [#allocation3], 4294967168 }
  0x2f   :  { %475 = dma.done.wait [#allocation5], 640  }
  0x30   :  { %476 = vsyncadd [#allocation5], 4294966656 }
  0x31   :  { %477 = dma.done.wait [#allocation8], 512  }
  0x32   :  { %478 = vsyncadd [#allocation8], 4294966784  ;;  %v485_v0 = vmov 0.0   ;;  %vm486_vm0 = vmmov 0   ;;  %v384_v1 = vld [vmem:[#allocation4] sm:$0xff]   ;;  %v80_v2 = vld [vmem:[#allocation2] sm:$0xff] }
  0x33   :  { %346 = vmatprep.subr.bf16.mxu0 %v485_v0  ;;  %348 = vmatprep.mubr.msk.bf16.mxu0 %vm486_vm0, %v485_v0  ;;  %v81_v3 = vpack.c.bf16 %v80_v2, %v80_v2  ;;  %vm97_vm1 = vcmask 130048   ;;  %v385_v4 = vld [vmem:[#allocation6 + $0x18] sm:$0xff]   ;;  %v386_v5 = vld [vmem:[#allocation6 + $0x10] sm:$0xff]   ;;  %v387_v6 = vld [vmem:[#allocation6 + $0x8] sm:$0xff]   ;;  %vm182_vm2 = vcmask 523264  }
  0x34   :  { %352 = vmatprep.subr.bf16.mxu1 %v485_v0  ;;  %360 = vmatprep.mubr.msk.bf16.mxu1 %vm486_vm0, %v485_v0  ;;  %v388_v7 = vld [vmem:[#allocation6] sm:$0xff]   ;;  %v389_v8 = vld [vmem:[#allocation7 + $0x18] sm:$0xff]   ;;  %v390_v9 = vld [vmem:[#allocation7 + $0x10] sm:$0xff]  }
  0x35   :  { %347 = vmatpush3.bf16.msra.mxu0 %v384_v1  ;;  %353 = vmatpush3.bf16.msra.mxu1 %v385_v4  ;;  %v319_v10 = vld [vmem:[%s564_s2] ss:$0 sm:$0xff]  ;;  %v391_v18 = vld [vmem:[#allocation7 + $0x8] sm:$0xff]   ;;  %v392_v19 = vld [vmem:[#allocation7] sm:$0xff]  }
  0x36   :  { %364 = vmatprep.subr.bf16.mxu0 %v485_v0  ;;  %354 = vmatprep.subr.bf16.mxu1 %v485_v0  ;;  %v322_v20 = vld [vmem:[%s566_s4] ss:$0 sm:$0xff] }
  0x37   :  { %v328_v28 = vld [vmem:[%s568_s6] ss:$0 sm:$0xff] }
  0x38   :  { %349 = vmatmul.mubr.msk.bf16.vlgmr.msra.gmra.mxu0 %vm97_vm1, %v81_v3 }
  0x39   :  { %372 = vmatprep.mubr.msk.bf16.mxu0 %vm486_vm0, %v485_v0  ;;  %355 = vmatpush3.bf16.msra.mxu1 %v386_v5 }
  0x3a   :  { %356 = vmatprep.subr.bf16.mxu1 %v485_v0  ;;  %365 = vmatpush3.bf16.msra.mxu0 %v389_v8 }
  0x3b   :  { %366 = vmatprep.subr.bf16.mxu0 %v485_v0 }
  0x3d   :  { %357 = vmatpush3.bf16.msra.mxu1 %v387_v6 }
  0x3e   :  { %358 = vmatprep.subr.bf16.mxu1 %v485_v0  ;;  %367 = vmatpush3.bf16.msra.mxu0 %v390_v9 }
  0x3f   :  { %368 = vmatprep.subr.bf16.mxu0 %v485_v0 }
  0x41   :  { %359 = vmatpush3.bf16.msra.mxu1 %v388_v7 }
  0x42   :  { %369 = vmatpush3.bf16.msra.mxu0 %v391_v18 }
  0x43   :  { %370 = vmatprep.subr.bf16.mxu0 %v485_v0 }
  0x46   :  { %371 = vmatpush3.bf16.msra.mxu0 %v392_v19 }
  0xf8   :  { %v135_v11 = vpop.f32.mrf.mxu0 }
  0xf9   :  { %v136_v12 = vadd.f32 %v319_v10, %v135_v11 }
  0xfa   :  { %v350_v13 = vpop.f32.mrf.mxu0 }
  0xfb   :  { %v141_v14 = vmax.f32 %v136_v12, 0.0 }
  0xfc   :  { %v138_v15 = vpop.f32.mrf.mxu0 }
  0xfd   :  { %v142_v16 = vpack.c.bf16 %v141_v14, %v141_v14 }
  0xfe   :  { %v351_v17 = vpop.f32.mrf.mxu0 }
  0xff   :  { %361 = vmatmul.mubr.msk.bf16.vlgmr.msra.gmra.mxu1 %vm182_vm2, %v142_v16 }
 0x1bf   :  { %v220_v21 = vpop.f32.mrf.mxu1 }
 0x1c0   :  { %v221_v22 = vadd.f32 %v322_v20, %v220_v21 }
 0x1c1   :  { %v362_v23 = vpop.f32.mrf.mxu1 }
 0x1c2   :  { %v226_v24 = vmax.f32 %v221_v22, 0.0 }
 0x1c3   :  { %v223_v25 = vpop.f32.mrf.mxu1 }
 0x1c4   :  { %v227_v26 = vpack.c.bf16 %v226_v24, %v226_v24 }
 0x1c5   :  { %v363_v27 = vpop.f32.mrf.mxu1 }
 0x1c6   :  { %373 = vmatmul.mubr.msk.bf16.vlgmr.msra.gmra.mxu0 %vm182_vm2, %v227_v26 }
 0x286   :  { %v304_v29 = vpop.f32.mrf.mxu0 }
 0x287   :  { %v305_v30 = vadd.f32 %v328_v28, %v304_v29 }
 0x288   :  { %v374_v31 = vpop.f32.mrf.mxu0 }
 0x289   :  { %v310_v32 = vpack.c.bf16 %v305_v30, %v305_v30 }
 0x28a   :  { %v307_v33 = vpop.f32.mrf.mxu0 }
 0x28b   :  { %311 = vst [vmem:[%s569_s7] sm:$0xf] %v310_v32 }
 0x28c   :  { %v375_v34 = vpop.f32.mrf.mxu0 }
 0x28d   :  { %316 = vsyncpa [#allocation3], 1 }
 0x28e   :  { %317 = vsyncpa [#allocation5], 1 }
 0x28f   :  { %318 = vsyncpa [#allocation8], 1 }

</bundles_post_ra>
